<compile_context>
chip_gen: v5e
topology: v5e:2x2
jax: 0.10.0
libtpu: 0.0.40
codegen_flags: <defaults>
</compile_context>

<pallas_src>
import jax
import jax.numpy as jnp
from jax import lax
from jax.experimental import pallas as pl
from jax.experimental.pallas import tpu as pltpu

EPS = 1e-5
SLOPE = 0.2


def _round_up(x, m):
    return (x + m - 1) // m * m


def _leaky_relu(x, slope=SLOPE):
    # max(x, slope*x) == LeakyReLU for 0 <= slope < 1 (one fewer VALU op than where()).
    return jnp.maximum(x, slope * x)


def task_specific_kernel(x_ref, w1_ref, b1_ref, w2_ref, b2_ref, w3_ref, b3_ref, o_ref):
    # ---- layer 1: (BN-folded) linear -> leaky_relu -> (dropout = identity) ----
    # x_ref is already bf16 (cast in the wrapper); accumulate in f32 on the MXU.
    h = jnp.dot(x_ref[...], w1_ref[...], preferred_element_type=jnp.float32) + b1_ref[...]
    h = _leaky_relu(h).astype(jnp.bfloat16)          # bf16 inter-layer activation

    # ---- layer 2 ----
    h = jnp.dot(h, w2_ref[...], preferred_element_type=jnp.float32) + b2_ref[...]
    h = _leaky_relu(h).astype(jnp.bfloat16)

    # ---- layer 3: final linear.  Matmul is lane-padded (D_outp); the store is not:
    # slice the real output columns in-register and write a narrow (masked) block.
    o = jnp.dot(h, w3_ref[...], preferred_element_type=jnp.float32) + b3_ref[...]
    d_out = o_ref.shape[-1]
    o_ref[...] = o[:, :d_out].astype(o_ref.dtype)


def _vmem_bytes(tile_b, d_in, h1p, h2p, d_outp, d_out):
    """Rough per-step VMEM footprint used to size tile_b and vmem_limit_bytes."""
    x_bytes = 2 * tile_b * d_in * 2                              # bf16 x, 2 buffers
    w_bytes = (d_in * h1p + h1p * h2p + h2p * d_outp) * 2        # bf16 weights, 1 buffer
    bias_bytes = (h1p + h2p + d_outp) * 4                        # f32 biases
    o_bytes = 2 * tile_b * d_out * 4                             # f32 out, 2 buffers
    h_bytes = tile_b * (max(h1p, h2p) * 4 + (h1p + h2p) * 2)     # f32 + bf16 intermediates
    return x_bytes + w_bytes + bias_bytes + o_bytes + h_bytes


def task_specific_layer(x, params, *, tile_b=None):
    """Fused eval-mode forward.  x: (B, D_in) float32.  Returns (B, d_output) f32."""
    B, D_in = x.shape
    f32 = jnp.float32

    # ---- host-side BN fold (running stats): W' = W*g*rsqrt(v+eps), b' = (b-m)*s + beta
    s1 = params["g1"] * lax.rsqrt(params["v1"] + EPS)
    w1 = params["w1"] * s1
    b1 = (params["b1"] - params["m1"]) * s1 + params["be1"]
    s2 = params["g2"] * lax.rsqrt(params["v2"] + EPS)
    w2 = params["w2"] * s2
    b2 = (params["b2"] - params["m2"]) * s2 + params["be2"]
    w3 = params["w3"]
    b3 = params["b3"]

    H1, H2, D_out = w1.shape[1], w2.shape[1], w3.shape[1]

    # ---- lane-pad hidden dims and the matmul's output dim to multiples of 128 ----
    H1p, H2p, D_outp = (_round_up(d, 128) for d in (H1, H2, D_out))
    w1 = jnp.pad(w1, ((0, 0), (0, H1p - H1)))
    b1 = jnp.pad(b1, ((0, 0), (0, H1p - H1)))
    w2 = jnp.pad(w2, ((0, H1p - H1), (0, H2p - H2)))
    b2 = jnp.pad(b2, ((0, 0), (0, H2p - H2)))
    w3 = jnp.pad(w3, ((0, H2p - H2), (0, D_outp - D_out)))
    b3 = jnp.pad(b3, ((0, 0), (0, D_outp - D_out)))

    # bf16 weights for the MXU; biases stay f32 for the epilogue add.
    w1, w2, w3 = (w.astype(jnp.bfloat16) for w in (w1, w2, w3))
    b1, b2, b3 = (b.astype(f32) for b in (b1, b2, b3))

    # ---- batch tile: single grid step for small B, else ~512-row tiles sized so the
    #      zero-row pad waste stays small; shrink the target if the VMEM footprint
    #      would stress v7x's 64 MiB budget.
    if tile_b is None:
        target = 512
        while target > 16 and _vmem_bytes(target, D_in, H1p, H2p, D_outp, D_out) > (48 << 20):
            target //= 2
        n_steps = max(1, -(-B // target))
        tile_b = -(-B // n_steps)
    tile_b = _round_up(max(tile_b, 8), 16)          # 16-row multiple (bf16 sublane packing)
    B_pad = _round_up(B, tile_b)
    if B_pad != B:
        x = jnp.pad(x, ((0, B_pad - B), (0, 0)))
    x = x.astype(jnp.bfloat16)                      # stream x at half the HBM bytes
    grid = (B_pad // tile_b,)

    needed = _vmem_bytes(tile_b, D_in, H1p, H2p, D_outp, D_out)
    vmem_limit = int(min(64 << 20, max(2 * needed, 8 << 20)))

    cost = pl.CostEstimate(
        flops=2 * B_pad * (D_in * H1p + H1p * H2p + H2p * D_outp),
        transcendentals=0,
        bytes_accessed=(B_pad * D_in * 2
                        + (D_in * H1p + H1p * H2p + H2p * D_outp) * 2
                        + (H1p + H2p + D_outp) * 4
                        + B_pad * D_out * 4),
    )

    def build(single_buffer_weights):
        def const(shape):
            # Grid-invariant operand: block index never changes, so one buffer suffices.
            if single_buffer_weights:
                return pl.BlockSpec(shape, lambda i: (0, 0), pipeline_mode=pl.Buffered(1))
            return pl.BlockSpec(shape, lambda i: (0, 0))

        in_specs = [
            pl.BlockSpec((tile_b, D_in), lambda i: (i, 0)),   # x streamed over batch tiles
            const((D_in, H1p)), const((1, H1p)),
            const((H1p, H2p)), const((1, H2p)),
            const((H2p, D_outp)), const((1, D_outp)),
        ]
        # Narrow (un-padded) output block: masked vst, but 128x less HBM writeback than
        # a 128-lane-padded slab, and no second pass in the wrapper to slice it off.
        out_specs = pl.BlockSpec((tile_b, D_out), lambda i: (i, 0))

        return pl.pallas_call(
            task_specific_kernel,
            out_shape=jax.ShapeDtypeStruct((B_pad, D_out), f32),
            grid_spec=pltpu.PrefetchScalarGridSpec(
                num_scalar_prefetch=0,
                grid=grid,
                in_specs=in_specs,
                out_specs=out_specs,
            ),
            compiler_params=pltpu.CompilerParams(
                dimension_semantics=("parallel",),
                vmem_limit_bytes=vmem_limit,
            ),
            cost_estimate=cost,
        )

    args = (x, w1, b1, w2, b2, w3, b3)
    try:
        out = build(True)(*args)
    except Exception:
        # TODO(synk): this jax build rejected pipeline_mode=pl.Buffered(1) on the
        # grid-invariant specs; fall back to default double buffering (costs VMEM only).
        out = build(False)(*args)
    return out[:B]


def init_params(key, d_in, d_hidden1, d_hidden2, d_output):
    """Deterministic synthetic parameters (shapes match the PyTorch module)."""
    ks = jax.random.split(key, 16)
    u = lambda k, shape, s=0.1: jax.random.uniform(k, shape, jnp.float32, -s, s)
    return {
        # linear_1 (weight stored (in, out) = PyTorch weight transposed)
        "w1": u(ks[0], (d_in, d_hidden1)),
        "b1": u(ks[1], (1, d_hidden1)),
        # batch_norm_1 (gamma, beta, running_mean, running_var)
        "g1": 1.0 + u(ks[2], (1, d_hidden1)),
        "be1": u(ks[3], (1, d_hidden1)),
        "m1": u(ks[4], (1, d_hidden1)),
        "v1": 0.5 + jax.random.uniform(ks[5], (1, d_hidden1), jnp.float32, 0.0, 1.0),
        # linear_2
        "w2": u(ks[6], (d_hidden1, d_hidden2)),
        "b2": u(ks[7], (1, d_hidden2)),
        # batch_norm_2
        "g2": 1.0 + u(ks[8], (1, d_hidden2)),
        "be2": u(ks[9], (1, d_hidden2)),
        "m2": u(ks[10], (1, d_hidden2)),
        "v2": 0.5 + jax.random.uniform(ks[11], (1, d_hidden2), jnp.float32, 0.0, 1.0),
        # linear_3
        "w3": u(ks[12], (d_hidden2, d_output)),
        "b3": u(ks[13], (1, d_output)),
    }


def reference_forward(x, p):
    """Plain-JAX f32 reference (eval-mode BN, dropout = identity)."""
    h = x @ p["w1"] + p["b1"]
    h = (h - p["m1"]) * lax.rsqrt(p["v1"] + EPS) * p["g1"] + p["be1"]
    h = _leaky_relu(h)
    h = h @ p["w2"] + p["b2"]
    h = (h - p["m2"]) * lax.rsqrt(p["v2"] + EPS) * p["g2"] + p["be2"]
    h = _leaky_relu(h)
    return h @ p["w3"] + p["b3"]


if __name__ == "__main__":
    # aggfunc='Flatten' -> input dim = n_genes * d_embed
    B = 32
    n_genes, d_embed = 8, 4
    d_in = n_genes * d_embed              # 32
    d_hidden1, d_hidden2, d_output = 128, 64, 1

    key = jax.random.PRNGKey(0)
    kx, kp = jax.random.split(key)
    x = jax.random.normal(kx, (B, d_in), jnp.float32)
    params = init_params(kp, d_in, d_hidden1, d_hidden2, d_output)

    # default tile_b: single grid step for this small batch (no per-step overhead waste)
    out = task_specific_layer(x, params)
    out = jax.block_until_ready(out)

    ref = reference_forward(x, params)
    assert out.shape == (B, d_output)
    # bf16 matmul inputs (f32 accumulation) -> loose tolerance vs the pure-f32 reference
    assert jnp.allclose(out, ref, atol=3e-2, rtol=3e-2), "mismatch vs reference"

    print("KERNEL_OK")
</pallas_src>

<mosaic_0001>
module attributes {stable_mosaic.version = 11 : i64} {
  func.func @task_specific_kernel(%arg0: i32, %arg1: memref<32x32xbf16, #tpu.memory_space<vmem>>, %arg2: memref<32x128xbf16, #tpu.memory_space<vmem>>, %arg3: memref<1x128xf32, #tpu.memory_space<vmem>>, %arg4: memref<128x128xbf16, #tpu.memory_space<vmem>>, %arg5: memref<1x128xf32, #tpu.memory_space<vmem>>, %arg6: memref<128x128xbf16, #tpu.memory_space<vmem>>, %arg7: memref<1x128xf32, #tpu.memory_space<vmem>>, %arg8: memref<32x1xf32, #tpu.memory_space<vmem>>) attributes {dimension_semantics = [#tpu.dimension_semantics<parallel>], iteration_bounds = array<i64: 1>, scalar_prefetch = 0 : i64, scratch_operands = 0 : i64, tpu.core_type = #tpu.core_type<tc>, window_params = [{transform_indices = @transform_0, window_bounds = array<i64: 32, 32>}, {pipeline_mode = #tpu.pipeline_mode<synchronous>, transform_indices = @transform_1, window_bounds = array<i64: 32, 128>}, {pipeline_mode = #tpu.pipeline_mode<synchronous>, transform_indices = @transform_2, window_bounds = array<i64: 1, 128>}, {pipeline_mode = #tpu.pipeline_mode<synchronous>, transform_indices = @transform_3, window_bounds = array<i64: 128, 128>}, {pipeline_mode = #tpu.pipeline_mode<synchronous>, transform_indices = @transform_4, window_bounds = array<i64: 1, 128>}, {pipeline_mode = #tpu.pipeline_mode<synchronous>, transform_indices = @transform_5, window_bounds = array<i64: 128, 128>}, {pipeline_mode = #tpu.pipeline_mode<synchronous>, transform_indices = @transform_6, window_bounds = array<i64: 1, 128>}, {transform_indices = @transform_7, window_bounds = array<i64: 32, 1>}]} {
    %c0 = arith.constant 0 : index
    %c0_0 = arith.constant 0 : index
    %0 = vector.load %arg1[%c0, %c0_0] : memref<32x32xbf16, #tpu.memory_space<vmem>>, vector<32x32xbf16>
    %c0_1 = arith.constant 0 : index
    %c0_2 = arith.constant 0 : index
    %1 = vector.load %arg2[%c0_1, %c0_2] : memref<32x128xbf16, #tpu.memory_space<vmem>>, vector<32x128xbf16>
    %cst = arith.constant dense<0.000000e+00> : vector<32x128xf32>
    %2 = tpu.matmul %0, %1, %cst {dimension_numbers = #tpu.dot_dimension_numbers<[1], [0], [0], [1], [0, 0, 1, 1], [], []>} : vector<32x32xbf16>, vector<32x128xbf16>, vector<32x128xf32> -> vector<32x128xf32>
    %c0_3 = arith.constant 0 : index
    %c0_4 = arith.constant 0 : index
    %3 = vector.load %arg3[%c0_3, %c0_4] : memref<1x128xf32, #tpu.memory_space<vmem>>, vector<1x128xf32>
    %4 = vector.broadcast %3 : vector<1x128xf32> to vector<32x128xf32>
    %5 = arith.addf %2, %4 : vector<32x128xf32>
    %cst_5 = arith.constant 2.000000e-01 : f32
    %6 = vector.broadcast %cst_5 : f32 to vector<32x128xf32>
    %7 = arith.mulf %6, %5 : vector<32x128xf32>
    %8 = arith.maximumf %5, %7 : vector<32x128xf32>
    %9 = arith.truncf %8 : vector<32x128xf32> to vector<32x128xbf16>
    %c0_6 = arith.constant 0 : index
    %c0_7 = arith.constant 0 : index
    %10 = vector.load %arg4[%c0_6, %c0_7] : memref<128x128xbf16, #tpu.memory_space<vmem>>, vector<128x128xbf16>
    %cst_8 = arith.constant dense<0.000000e+00> : vector<32x128xf32>
    %11 = tpu.matmul %9, %10, %cst_8 {dimension_numbers = #tpu.dot_dimension_numbers<[1], [0], [0], [1], [0, 0, 1, 1], [], []>} : vector<32x128xbf16>, vector<128x128xbf16>, vector<32x128xf32> -> vector<32x128xf32>
    %c0_9 = arith.constant 0 : index
    %c0_10 = arith.constant 0 : index
    %12 = vector.load %arg5[%c0_9, %c0_10] : memref<1x128xf32, #tpu.memory_space<vmem>>, vector<1x128xf32>
    %13 = vector.broadcast %12 : vector<1x128xf32> to vector<32x128xf32>
    %14 = arith.addf %11, %13 : vector<32x128xf32>
    %cst_11 = arith.constant 2.000000e-01 : f32
    %15 = vector.broadcast %cst_11 : f32 to vector<32x128xf32>
    %16 = arith.mulf %15, %14 : vector<32x128xf32>
    %17 = arith.maximumf %14, %16 : vector<32x128xf32>
    %18 = arith.truncf %17 : vector<32x128xf32> to vector<32x128xbf16>
    %c0_12 = arith.constant 0 : index
    %c0_13 = arith.constant 0 : index
    %19 = vector.load %arg6[%c0_12, %c0_13] : memref<128x128xbf16, #tpu.memory_space<vmem>>, vector<128x128xbf16>
    %cst_14 = arith.constant dense<0.000000e+00> : vector<32x128xf32>
    %20 = tpu.matmul %18, %19, %cst_14 {dimension_numbers = #tpu.dot_dimension_numbers<[1], [0], [0], [1], [0, 0, 1, 1], [], []>} : vector<32x128xbf16>, vector<128x128xbf16>, vector<32x128xf32> -> vector<32x128xf32>
    %c0_15 = arith.constant 0 : index
    %c0_16 = arith.constant 0 : index
    %21 = vector.load %arg7[%c0_15, %c0_16] : memref<1x128xf32, #tpu.memory_space<vmem>>, vector<1x128xf32>
    %22 = vector.broadcast %21 : vector<1x128xf32> to vector<32x128xf32>
    %23 = arith.addf %20, %22 : vector<32x128xf32>
    %24 = vector.extract_strided_slice %23 {offsets = [0, 0], sizes = [32, 1], strides = [1, 1]} : vector<32x128xf32> to vector<32x1xf32>
    %c0_17 = arith.constant 0 : index
    %c0_18 = arith.constant 0 : index
    %25 = vector.load %arg8[%c0_17, %c0_18] : memref<32x1xf32, #tpu.memory_space<vmem>>, vector<32x1xf32>
    tpu.vector_store %arg8[%c0_17, %c0_18], %24 {strides = array<i32>} : memref<32x1xf32, #tpu.memory_space<vmem>>, vector<32x1xf32>,
    return
  }
  func.func @transform_0(%arg0: i32) -> (i32, i32) {
    %c0_i32 = arith.constant 0 : i32
    %c0_i32_0 = arith.constant 0 : i32
    return %arg0, %c0_i32 : i32, i32
  }
  func.func @transform_1(%arg0: i32) -> (i32, i32) {
    %c0_i32 = arith.constant 0 : i32
    %c0_i32_0 = arith.constant 0 : i32
    %c0_i32_1 = arith.constant 0 : i32
    return %c0_i32, %c0_i32_0 : i32, i32
  }
  func.func @transform_2(%arg0: i32) -> (i32, i32) {
    %c0_i32 = arith.constant 0 : i32
    %c0_i32_0 = arith.constant 0 : i32
    %c0_i32_1 = arith.constant 0 : i32
    return %c0_i32, %c0_i32_0 : i32, i32
  }
  func.func @transform_3(%arg0: i32) -> (i32, i32) {
    %c0_i32 = arith.constant 0 : i32
    %c0_i32_0 = arith.constant 0 : i32
    %c0_i32_1 = arith.constant 0 : i32
    return %c0_i32, %c0_i32_0 : i32, i32
  }
  func.func @transform_4(%arg0: i32) -> (i32, i32) {
    %c0_i32 = arith.constant 0 : i32
    %c0_i32_0 = arith.constant 0 : i32
    %c0_i32_1 = arith.constant 0 : i32
    return %c0_i32, %c0_i32_0 : i32, i32
  }
  func.func @transform_5(%arg0: i32) -> (i32, i32) {
    %c0_i32 = arith.constant 0 : i32
    %c0_i32_0 = arith.constant 0 : i32
    %c0_i32_1 = arith.constant 0 : i32
    return %c0_i32, %c0_i32_0 : i32, i32
  }
  func.func @transform_6(%arg0: i32) -> (i32, i32) {
    %c0_i32 = arith.constant 0 : i32
    %c0_i32_0 = arith.constant 0 : i32
    %c0_i32_1 = arith.constant 0 : i32
    return %c0_i32, %c0_i32_0 : i32, i32
  }
  func.func @transform_7(%arg0: i32) -> (i32, i32) {
    %c0_i32 = arith.constant 0 : i32
    %c0_i32_0 = arith.constant 0 : i32
    return %arg0, %c0_i32 : i32, i32
  }
}

module attributes {stable_mosaic.version = 11 : i64} {
  func.func @task_specific_kernel(%arg0: i32, %arg1: memref<32x32xbf16, #tpu.memory_space<vmem>>, %arg2: memref<32x128xbf16, #tpu.memory_space<vmem>>, %arg3: memref<1x128xf32, #tpu.memory_space<vmem>>, %arg4: memref<128x128xbf16, #tpu.memory_space<vmem>>, %arg5: memref<1x128xf32, #tpu.memory_space<vmem>>, %arg6: memref<128x128xbf16, #tpu.memory_space<vmem>>, %arg7: memref<1x128xf32, #tpu.memory_space<vmem>>, %arg8: memref<32x1xf32, #tpu.memory_space<vmem>>) attributes {dimension_semantics = [#tpu.dimension_semantics<parallel>], iteration_bounds = array<i64: 1>, scalar_prefetch = 0 : i64, scratch_operands = 0 : i64, tpu.core_type = #tpu.core_type<tc>, window_params = [{transform_indices = @transform_0, window_bounds = array<i64: 32, 32>}, {pipeline_mode = #tpu.pipeline_mode<synchronous>, transform_indices = @transform_1, window_bounds = array<i64: 32, 128>}, {pipeline_mode = #tpu.pipeline_mode<synchronous>, transform_indices = @transform_2, window_bounds = array<i64: 1, 128>}, {pipeline_mode = #tpu.pipeline_mode<synchronous>, transform_indices = @transform_3, window_bounds = array<i64: 128, 128>}, {pipeline_mode = #tpu.pipeline_mode<synchronous>, transform_indices = @transform_4, window_bounds = array<i64: 1, 128>}, {pipeline_mode = #tpu.pipeline_mode<synchronous>, transform_indices = @transform_5, window_bounds = array<i64: 128, 128>}, {pipeline_mode = #tpu.pipeline_mode<synchronous>, transform_indices = @transform_6, window_bounds = array<i64: 1, 128>}, {transform_indices = @transform_7, window_bounds = array<i64: 32, 1>}]} {
    %c0 = arith.constant 0 : index
    %c0_0 = arith.constant 0 : index
    %0 = vector.load %arg1[%c0, %c0_0] : memref<32x32xbf16, #tpu.memory_space<vmem>>, vector<32x32xbf16>
    %c0_1 = arith.constant 0 : index
    %c0_2 = arith.constant 0 : index
    %1 = vector.load %arg2[%c0_1, %c0_2] : memref<32x128xbf16, #tpu.memory_space<vmem>>, vector<32x128xbf16>
    %cst = arith.constant dense<0.000000e+00> : vector<32x128xf32>
    %2 = tpu.matmul %0, %1, %cst {dimension_numbers = #tpu.dot_dimension_numbers<[1], [0], [0], [1], [0, 0, 1, 1], [], []>} : vector<32x32xbf16>, vector<32x128xbf16>, vector<32x128xf32> -> vector<32x128xf32>
    %c0_3 = arith.constant 0 : index
    %c0_4 = arith.constant 0 : index
    %3 = vector.load %arg3[%c0_3, %c0_4] : memref<1x128xf32, #tpu.memory_space<vmem>>, vector<1x128xf32>
    %4 = vector.broadcast %3 : vector<1x128xf32> to vector<32x128xf32>
    %5 = arith.addf %2, %4 : vector<32x128xf32>
    %cst_5 = arith.constant 2.000000e-01 : f32
    %6 = vector.broadcast %cst_5 : f32 to vector<32x128xf32>
    %7 = arith.mulf %6, %5 : vector<32x128xf32>
    %8 = arith.maximumf %5, %7 : vector<32x128xf32>
    %9 = arith.truncf %8 : vector<32x128xf32> to vector<32x128xbf16>
    %c0_6 = arith.constant 0 : index
    %c0_7 = arith.constant 0 : index
    %10 = vector.load %arg4[%c0_6, %c0_7] : memref<128x128xbf16, #tpu.memory_space<vmem>>, vector<128x128xbf16>
    %cst_8 = arith.constant dense<0.000000e+00> : vector<32x128xf32>
    %11 = tpu.matmul %9, %10, %cst_8 {dimension_numbers = #tpu.dot_dimension_numbers<[1], [0], [0], [1], [0, 0, 1, 1], [], []>} : vector<32x128xbf16>, vector<128x128xbf16>, vector<32x128xf32> -> vector<32x128xf32>
    %c0_9 = arith.constant 0 : index
    %c0_10 = arith.constant 0 : index
    %12 = vector.load %arg5[%c0_9, %c0_10] : memref<1x128xf32, #tpu.memory_space<vmem>>, vector<1x128xf32>
    %13 = vector.broadcast %12 : vector<1x128xf32> to vector<32x128xf32>
    %14 = arith.addf %11, %13 : vector<32x128xf32>
    %cst_11 = arith.constant 2.000000e-01 : f32
    %15 = vector.broadcast %cst_11 : f32 to vector<32x128xf32>
    %16 = arith.mulf %15, %14 : vector<32x128xf32>
    %17 = arith.maximumf %14, %16 : vector<32x128xf32>
    %18 = arith.truncf %17 : vector<32x128xf32> to vector<32x128xbf16>
    %c0_12 = arith.constant 0 : index
    %c0_13 = arith.constant 0 : index
    %19 = vector.load %arg6[%c0_12, %c0_13] : memref<128x128xbf16, #tpu.memory_space<vmem>>, vector<128x128xbf16>
    %cst_14 = arith.constant dense<0.000000e+00> : vector<32x128xf32>
    %20 = tpu.matmul %18, %19, %cst_14 {dimension_numbers = #tpu.dot_dimension_numbers<[1], [0], [0], [1], [0, 0, 1, 1], [], []>} : vector<32x128xbf16>, vector<128x128xbf16>, vector<32x128xf32> -> vector<32x128xf32>
    %c0_15 = arith.constant 0 : index
    %c0_16 = arith.constant 0 : index
    %21 = vector.load %arg7[%c0_15, %c0_16] : memref<1x128xf32, #tpu.memory_space<vmem>>, vector<1x128xf32>
    %22 = vector.broadcast %21 : vector<1x128xf32> to vector<32x128xf32>
    %23 = arith.addf %20, %22 : vector<32x128xf32>
    %24 = vector.extract_strided_slice %23 {offsets = [0, 0], sizes = [32, 1], strides = [1, 1]} : vector<32x128xf32> to vector<32x1xf32>
    %c0_17 = arith.constant 0 : index
    %c0_18 = arith.constant 0 : index
    %25 = vector.load %arg8[%c0_17, %c0_18] : memref<32x1xf32, #tpu.memory_space<vmem>>, vector<32x1xf32>
    tpu.vector_store %arg8[%c0_17, %c0_18], %24 {strides = array<i32>} : memref<32x1xf32, #tpu.memory_space<vmem>>, vector<32x1xf32>,
    return
  }
  func.func @transform_0(%arg0: i32) -> (i32, i32) {
    %c0_i32 = arith.constant 0 : i32
    %c0_i32_0 = arith.constant 0 : i32
    return %arg0, %c0_i32 : i32, i32
  }
  func.func @transform_1(%arg0: i32) -> (i32, i32) {
    %c0_i32 = arith.constant 0 : i32
    %c0_i32_0 = arith.constant 0 : i32
    %c0_i32_1 = arith.constant 0 : i32
    return %c0_i32, %c0_i32_0 : i32, i32
  }
  func.func @transform_2(%arg0: i32) -> (i32, i32) {
    %c0_i32 = arith.constant 0 : i32
    %c0_i32_0 = arith.constant 0 : i32
    %c0_i32_1 = arith.constant 0 : i32
    return %c0_i32, %c0_i32_0 : i32, i32
  }
  func.func @transform_3(%arg0: i32) -> (i32, i32) {
    %c0_i32 = arith.constant 0 : i32
    %c0_i32_0 = arith.constant 0 : i32
    %c0_i32_1 = arith.constant 0 : i32
    return %c0_i32, %c0_i32_0 : i32, i32
  }
  func.func @transform_4(%arg0: i32) -> (i32, i32) {
    %c0_i32 = arith.constant 0 : i32
    %c0_i32_0 = arith.constant 0 : i32
    %c0_i32_1 = arith.constant 0 : i32
    return %c0_i32, %c0_i32_0 : i32, i32
  }
  func.func @transform_5(%arg0: i32) -> (i32, i32) {
    %c0_i32 = arith.constant 0 : i32
    %c0_i32_0 = arith.constant 0 : i32
    %c0_i32_1 = arith.constant 0 : i32
    return %c0_i32, %c0_i32_0 : i32, i32
  }
  func.func @transform_6(%arg0: i32) -> (i32, i32) {
    %c0_i32 = arith.constant 0 : i32
    %c0_i32_0 = arith.constant 0 : i32
    %c0_i32_1 = arith.constant 0 : i32
    return %c0_i32, %c0_i32_0 : i32, i32
  }
  func.func @transform_7(%arg0: i32) -> (i32, i32) {
    %c0_i32 = arith.constant 0 : i32
    %c0_i32_0 = arith.constant 0 : i32
    return %arg0, %c0_i32 : i32, i32
  }
}

</mosaic_0001>

<bundles_post_ra>
// kernel: tpu_custom_call.1
= control target key start
LH: loop header
LB: loop body
LE: loop exit
PB: predicated region body
PF: predicated region fallthrough
CT: control target
= control target key end

     0   :  { %12 = vsyncpa [#allocation3], 0  ;;  %s664_s0 = inlined_call_operand.hbm [shape: bf16[32,32], index: 0, kind: input, shape index: {}]   ;;  %s665_s1 = inlined_call_operand.hbm [shape: bf16[32,128], index: 1, kind: input, shape index: {}]   ;;  %s666_s2 = inlined_call_operand.vmem [shape: f32[1,128], index: 2, kind: input, shape index: {}]   ;;  %s667_s3 = inlined_call_operand.hbm [shape: bf16[128,128], index: 3, kind: input, shape index: {}]   ;;  %s668_s4 = inlined_call_operand.vmem [shape: f32[1,128], index: 4, kind: input, shape index: {}]   ;;  %s669_s5 = inlined_call_operand.hbm [shape: bf16[128,128], index: 5, kind: input, shape index: {}]   ;;  %s670_s6 = inlined_call_operand.vmem [shape: f32[1,128], index: 6, kind: input, shape index: {}]   ;;  %s671_s7 = inlined_call_operand.vmem [shape: f32[32,1], index: 7, kind: output, shape index: {}]  }
   0x1   :  { %13 = vsyncpa [#allocation5], 0 }
   0x2   :  { %14 = vsyncpa [#allocation8], 0  ;;  %s32_s26 = sshll.u32 %s665_s1, 4  ;;  %s585_s27 = smov [#allocation4]   ;;  %s33_s26 = int_to_ptr.hbm [resolvable:$true] %s32_s26 }
   0x3   :  { %s34_s28 = sshll.u32 %s585_s27, 4  ;;  %s19_s8 = sshll.u32 %s664_s0, 4  ;;  %s35_s28 = int_to_ptr.vmem [resolvable:$true] %s34_s28  ;;  %s20_s8 = int_to_ptr.hbm [resolvable:$true] %s19_s8 }
   0x4   :  { %s586_s9 = smov 64   ;;  %s587_s10 = smov 4  }
   0x5   :  { %40 = dma.hbm_to_vmem [thread:$0]  %s33_s26, 256, %s35_s28, [#allocation5], %s586_s9, %s586_s9, %s587_s10  }
   0x6   :  { %s588_s11 = smov [#allocation2]   ;;  %s47_s15 = sshll.u32 %s667_s3, 4  ;;  %s48_s15 = int_to_ptr.hbm [resolvable:$true] %s47_s15 }
   0x7   :  { %s21_s12 = sshll.u32 %s588_s11, 4  ;;  %s62_s17 = sshll.u32 %s669_s5, 4  ;;  %s22_s12 = int_to_ptr.vmem [resolvable:$true] %s21_s12  ;;  %s63_s17 = int_to_ptr.hbm [resolvable:$true] %s62_s17 }
   0x8   :  { %27 = dma.hbm_to_vmem [thread:$0]  %s20_s8, 256, %s22_s12, [#allocation3], %s586_s9, %s586_s9, %s587_s10  }
   0x9   :  { %s589_s18 = smov [#allocation6]   ;;  %s590_s0 = smov [#allocation7]  }
   0xa   :  { %s49_s19 = sshll.u32 %s589_s18, 4  ;;  %s64_s20 = sshll.u32 %s590_s0, 4  ;;  %s50_s19 = int_to_ptr.vmem [resolvable:$true] %s49_s19  ;;  %s65_s20 = int_to_ptr.vmem [resolvable:$true] %s64_s20 }
   0xb   :  { %55 = dma.hbm_to_vmem [thread:$0]  %s48_s15, 1024, %s50_s19, [#allocation5], %s586_s9, %s586_s9, %s587_s10  }
   0xc   :  { %70 = dma.hbm_to_vmem [thread:$0]  %s63_s17, 1024, %s65_s20, [#allocation8], %s586_s9, %s586_s9, %s587_s10  }
   0xd   :  { %579 = dma.done.wait [#allocation3], 256  }
   0xe   :  { %580 = vsyncadd [#allocation3], 4294967040 }
   0xf   :  { %581 = dma.done.wait [#allocation5], 1280  }
  0x10   :  { %582 = vsyncadd [#allocation5], 4294966016 }
  0x11   :  { %583 = dma.done.wait [#allocation8], 1024  }
  0x12   :  { %584 = vsyncadd [#allocation8], 4294966272  ;;  %v441_v0 = vld [vmem:[#allocation4 + $0x8] sm:$0xff]  ;;  %v440_v2 = vld [vmem:[#allocation4] sm:$0xff]  ;;  %vm124_vm0 = vcmask 261120   ;;  %vm344_vm1 = vcmask 7168  }
  0x13   :  { %v449_v1 = vld [vmem:[#allocation6 + $0x38] sm:$0xff]  ;;  %137 = vmatpush.bf16.msra.mxu0 %v441_v0  ;;  %v448_v3 = vld [vmem:[#allocation6 + $0x30] sm:$0xff]  ;;  %v438_v4 = vld [vmem:[#allocation2] sm:$0xff] }
  0x14   :  { %228 = vmatpush.bf16.msra.mxu1 %v449_v1  ;;  %458 = vmatpush.bf16.msra.mxu3 %v449_v1  ;;  %v447_v5 = vld [vmem:[#allocation6 + $0x28] sm:$0xff]  ;;  %v446_v6 = vld [vmem:[#allocation6 + $0x20] sm:$0xff]  ;;  %v445_v8 = vld [vmem:[#allocation6 + $0x18] sm:$0xff] }
  0x15   :  { %v439_v7 = vld [vmem:[#allocation2 + $0x8] sm:$0xff]  ;;  %v444_v9 = vld [vmem:[#allocation6 + $0x10] sm:$0xff]  ;;  %v442_v11 = vld [vmem:[#allocation6] sm:$0xff] }
  0x16   :  { %v443_v10 = vld [vmem:[#allocation6 + $0x8] sm:$0xff]  ;;  %v480_v13 = vld [vmem:[%s666_s2] ss:$0 sm:$0xff]  ;;  %v457_v14 = vld [vmem:[#allocation7 + $0x38] sm:$0xff] }
  0x17   :  { %138 = vmatpush.bf16.msra.mxu0 %v440_v2  ;;  %v456_v15 = vld [vmem:[#allocation7 + $0x30] sm:$0xff]  ;;  %466 = vmatpush.bf16.msra.mxu2 %v457_v14  ;;  %v455_v17 = vld [vmem:[#allocation7 + $0x28] sm:$0xff]  ;;  %v454_v22 = vld [vmem:[#allocation7 + $0x20] sm:$0xff] }
  0x18   :  { %229 = vmatpush.bf16.msra.mxu1 %v448_v3  ;;  %459 = vmatpush.bf16.msra.mxu3 %v448_v3  ;;  %v453_v35 = vld [vmem:[#allocation7 + $0x18] sm:$0xff]  ;;  %v452_v36 = vld [vmem:[#allocation7 + $0x10] sm:$0xff]  ;;  %v451_v37 = vld [vmem:[#allocation7 + $0x8] sm:$0xff] }
  0x19   :  { %v450_v38 = vld [vmem:[#allocation7] sm:$0xff] }
  0x1a   :  { %372 = vmatmul.msk.bf16.vlgmr.msra.gmra.mxu0 %vm124_vm0, %v438_v4  ;;  %v481_v40 = vld [vmem:[%s668_s4] ss:$0 sm:$0xff] }
  0x1b   :  { %325 = vmatpush.bf16.msrb.mxu0 %v457_v14  ;;  %467 = vmatpush.bf16.msra.mxu2 %v456_v15  ;;  %v482_v58 = vld [vmem:[%s670_s6] ss:$0 sm:$0xff] }
  0x1c   :  { %230 = vmatpush.bf16.msra.mxu1 %v447_v5  ;;  %460 = vmatpush.bf16.msra.mxu3 %v447_v5 }
  0x1f   :  { %326 = vmatpush.bf16.msrb.mxu0 %v456_v15  ;;  %468 = vmatpush.bf16.msra.mxu2 %v455_v17 }
  0x20   :  { %231 = vmatpush.bf16.msra.mxu1 %v446_v6  ;;  %461 = vmatpush.bf16.msra.mxu3 %v446_v6 }
  0x23   :  { %327 = vmatpush.bf16.msrb.mxu0 %v455_v17  ;;  %469 = vmatpush.bf16.msra.mxu2 %v454_v22 }
  0x24   :  { %232 = vmatpush.bf16.msra.mxu1 %v445_v8  ;;  %462 = vmatpush.bf16.msra.mxu3 %v445_v8 }
  0x27   :  { %328 = vmatpush.bf16.msrb.mxu0 %v454_v22  ;;  %470 = vmatpush.bf16.msra.mxu2 %v453_v35 }
  0x28   :  { %233 = vmatpush.bf16.msra.mxu1 %v444_v9  ;;  %463 = vmatpush.bf16.msra.mxu3 %v444_v9 }
  0x2a   :  { %373 = vmatmul.msk.bf16.gmra.mxu0 %vm124_vm0, %v439_v7 }
  0x2b   :  { %329 = vmatpush.bf16.msrb.mxu0 %v453_v35  ;;  %471 = vmatpush.bf16.msra.mxu2 %v452_v36 }
  0x2c   :  { %234 = vmatpush.bf16.msra.mxu1 %v443_v10  ;;  %464 = vmatpush.bf16.msra.mxu3 %v443_v10 }
  0x2f   :  { %330 = vmatpush.bf16.msrb.mxu0 %v452_v36  ;;  %472 = vmatpush.bf16.msra.mxu2 %v451_v37 }
  0x30   :  { %235 = vmatpush.bf16.msra.mxu1 %v442_v11  ;;  %465 = vmatpush.bf16.msra.mxu3 %v442_v11 }
  0x33   :  { %331 = vmatpush.bf16.msrb.mxu0 %v451_v37  ;;  %473 = vmatpush.bf16.msra.mxu2 %v450_v38 }
  0x37   :  { %332 = vmatpush.bf16.msrb.mxu0 %v450_v38 }
  0x97   :  { %v140_v12 = vpop.f32.mrf.mxu0 }
  0x98   :  { %v141_v16 = vadd.f32 %v480_v13, %v140_v12 }
  0x9a   :  { %v150_v19 = vmul.f32 0.2, %v141_v16 }
  0x9c   :  { %v154_v23 = vmax.f32 %v141_v16, %v150_v19 }
  0x9f   :  { %v142_v18 = vpop.f32.mrf.mxu0 }
  0xa0   :  { %v143_v20 = vadd.f32 %v480_v13, %v142_v18 }
  0xa2   :  { %v151_v21 = vmul.f32 0.2, %v143_v20 }
  0xa4   :  { %v155_v24 = vmax.f32 %v143_v20, %v151_v21 }
  0xa6   :  { %v158_v25 = vpack.c.bf16 %v155_v24, %v154_v23 }
  0xa7   :  { %v145_v26 = vpop.f32.mrf.mxu0 }
  0xa8   :  { %236 = vmatmul.bf16.vlgmr.msra.gmra.mxu1 %v158_v25  ;;  %v146_v27 = vadd.f32 %v480_v13, %v145_v26 }
  0xaa   :  { %v152_v29 = vmul.f32 0.2, %v146_v27 }
  0xac   :  { %v156_v32 = vmax.f32 %v146_v27, %v152_v29 }
  0xaf   :  { %v147_v28 = vpop.f32.mrf.mxu0 }
  0xb0   :  { %v148_v30 = vadd.f32 %v480_v13, %v147_v28 }
  0xb2   :  { %v153_v31 = vmul.f32 0.2, %v148_v30 }
  0xb4   :  { %v157_v33 = vmax.f32 %v148_v30, %v153_v31 }
  0xb6   :  { %v159_v34 = vpack.c.bf16 %v157_v33, %v156_v32 }
  0xb8   :  { %241 = vmatmul.bf16.vlgmr.msra.gmra.mxu3 %v159_v34 }
 0x125   :  { %v237_v39 = vpop.f32.mrf.mxu1 }
 0x126   :  { %v238_v41 = vadd.f32 %v481_v40, %v237_v39 }
 0x128   :  { %v247_v43 = vmul.f32 0.2, %v238_v41 }
 0x12a   :  { %v251_v46 = vmax.f32 %v238_v41, %v247_v43 }
 0x12d   :  { %v239_v42 = vpop.f32.mrf.mxu1 }
 0x12e   :  { %v240_v44 = vadd.f32 %v481_v40, %v239_v42 }
 0x130   :  { %v248_v45 = vmul.f32 0.2, %v240_v44 }
 0x132   :  { %v252_v47 = vmax.f32 %v240_v44, %v248_v45 }
 0x134   :  { %v255_v48 = vpack.c.bf16 %v252_v47, %v251_v46 }
 0x136   :  { %333 = vmatmul.bf16.vlgmr.msrb.gmra.mxu0 %v255_v48 }
 0x13b   :  { %v242_v49 = vpop.f32.mrf.mxu3 }
 0x13c   :  { %v243_v50 = vadd.f32 %v481_v40, %v242_v49 }
 0x13e   :  { %v249_v52 = vmul.f32 0.2, %v243_v50 }
 0x140   :  { %v253_v55 = vmax.f32 %v243_v50, %v249_v52 }
 0x143   :  { %v244_v51 = vpop.f32.mrf.mxu3 }
 0x144   :  { %v245_v53 = vadd.f32 %v481_v40, %v244_v51 }
 0x146   :  { %v250_v54 = vmul.f32 0.2, %v245_v53 }
 0x148   :  { %v254_v56 = vmax.f32 %v245_v53, %v250_v54 }
 0x14a   :  { %v256_v57 = vpack.c.bf16 %v254_v56, %v253_v55 }
 0x14c   :  { %338 = vmatmul.bf16.vlgmr.msra.gmra.mxu2 %v256_v57 }
 0x1b3   :  { %v334_v59 = vpop.f32.mrf.mxu0 }
 0x1b4   :  { %v335_v60 = vadd.f32 %v482_v58, %v334_v59 }
 0x1b6   :  { %345 = vst.msk [vmem:[%s671_s7] sm:$0xff] %vm344_vm1, %v335_v60 }
 0x1bb   :  { %v336_v61 = vpop.f32.mrf.mxu0 }
 0x1bc   :  { %v337_v62 = vadd.f32 %v482_v58, %v336_v61 }
 0x1be   :  { %346 = vst.msk [vmem:[%s671_s7 + $0x8] sm:$0xff] %vm344_vm1, %v337_v62 }
 0x1cf   :  { %v339_v63 = vpop.f32.mrf.mxu2 }
 0x1d0   :  { %v340_v0 = vadd.f32 %v482_v58, %v339_v63 }
 0x1d2   :  { %347 = vst.msk [vmem:[%s671_s7 + $0x10] sm:$0xff] %vm344_vm1, %v340_v0 }
 0x1d7   :  { %v341_v1 = vpop.f32.mrf.mxu2 }
 0x1d8   :  { %v342_v2 = vadd.f32 %v482_v58, %v341_v1 }
 0x1da   :  { %348 = vst.msk [vmem:[%s671_s7 + $0x18] sm:$0xff] %vm344_vm1, %v342_v2 }
 0x1db   :  { %353 = vsyncpa [#allocation3], 1 }
 0x1dc   :  { %354 = vsyncpa [#allocation5], 1 }
 0x1dd   :  { %355 = vsyncpa [#allocation8], 1 }

// kernel: tpu_custom_call.1
= control target key start
LH: loop header
LB: loop body
LE: loop exit
PB: predicated region body
PF: predicated region fallthrough
CT: control target
= control target key end

     0   :  { %12 = vsyncpa [#allocation3], 0  ;;  %s664_s0 = inlined_call_operand.hbm [shape: bf16[32,32], index: 0, kind: input, shape index: {}]   ;;  %s665_s1 = inlined_call_operand.hbm [shape: bf16[32,128], index: 1, kind: input, shape index: {}]   ;;  %s666_s2 = inlined_call_operand.vmem [shape: f32[1,128], index: 2, kind: input, shape index: {}]   ;;  %s667_s3 = inlined_call_operand.hbm [shape: bf16[128,128], index: 3, kind: input, shape index: {}]   ;;  %s668_s4 = inlined_call_operand.vmem [shape: f32[1,128], index: 4, kind: input, shape index: {}]   ;;  %s669_s5 = inlined_call_operand.hbm [shape: bf16[128,128], index: 5, kind: input, shape index: {}]   ;;  %s670_s6 = inlined_call_operand.vmem [shape: f32[1,128], index: 6, kind: input, shape index: {}]   ;;  %s671_s7 = inlined_call_operand.vmem [shape: f32[32,1], index: 7, kind: output, shape index: {}]  }
   0x1   :  { %13 = vsyncpa [#allocation5], 0 }
   0x2   :  { %14 = vsyncpa [#allocation8], 0  ;;  %s32_s26 = sshll.u32 %s665_s1, 4  ;;  %s585_s27 = smov [#allocation4]   ;;  %s33_s26 = int_to_ptr.hbm [resolvable:$true] %s32_s26 }
   0x3   :  { %s34_s28 = sshll.u32 %s585_s27, 4  ;;  %s19_s8 = sshll.u32 %s664_s0, 4  ;;  %s35_s28 = int_to_ptr.vmem [resolvable:$true] %s34_s28  ;;  %s20_s8 = int_to_ptr.hbm [resolvable:$true] %s19_s8 }
   0x4   :  { %s586_s9 = smov 64   ;;  %s587_s10 = smov 4  }
   0x5   :  { %40 = dma.hbm_to_vmem [thread:$0]  %s33_s26, 256, %s35_s28, [#allocation5], %s586_s9, %s586_s9, %s587_s10  }
   0x6   :  { %s588_s11 = smov [#allocation2]   ;;  %s47_s15 = sshll.u32 %s667_s3, 4  ;;  %s48_s15 = int_to_ptr.hbm [resolvable:$true] %s47_s15 }
   0x7   :  { %s21_s12 = sshll.u32 %s588_s11, 4  ;;  %s62_s17 = sshll.u32 %s669_s5, 4  ;;  %s22_s12 = int_to_ptr.vmem [resolvable:$true] %s21_s12  ;;  %s63_s17 = int_to_ptr.hbm [resolvable:$true] %s62_s17 }
   0x8   :  { %27 = dma.hbm_to_vmem [thread:$0]  %s20_s8, 256, %s22_s12, [#allocation3], %s586_s9, %s586_s9, %s587_s10  }
   0x9   :  { %s589_s18 = smov [#allocation6]   ;;  %s590_s0 = smov [#allocation7]  }
   0xa   :  { %s49_s19 = sshll.u32 %s589_s18, 4  ;;  %s64_s20 = sshll.u32 %s590_s0, 4  ;;  %s50_s19 = int_to_ptr.vmem [resolvable:$true] %s49_s19  ;;  %s65_s20 = int_to_ptr.vmem [resolvable:$true] %s64_s20 }
   0xb   :  { %55 = dma.hbm_to_vmem [thread:$0]  %s48_s15, 1024, %s50_s19, [#allocation5], %s586_s9, %s586_s9, %s587_s10  }
   0xc   :  { %70 = dma.hbm_to_vmem [thread:$0]  %s63_s17, 1024, %s65_s20, [#allocation8], %s586_s9, %s586_s9, %s587_s10  }
   0xd   :  { %579 = dma.done.wait [#allocation3], 256  }
   0xe   :  { %580 = vsyncadd [#allocation3], 4294967040 }
   0xf   :  { %581 = dma.done.wait [#allocation5], 1280  }
  0x10   :  { %582 = vsyncadd [#allocation5], 4294966016 }
  0x11   :  { %583 = dma.done.wait [#allocation8], 1024  }
  0x12   :  { %584 = vsyncadd [#allocation8], 4294966272  ;;  %v441_v0 = vld [vmem:[#allocation4 + $0x8] sm:$0xff]  ;;  %v440_v2 = vld [vmem:[#allocation4] sm:$0xff]  ;;  %vm124_vm0 = vcmask 261120   ;;  %vm344_vm1 = vcmask 7168  }
  0x13   :  { %v449_v1 = vld [vmem:[#allocation6 + $0x38] sm:$0xff]  ;;  %137 = vmatpush.bf16.msra.mxu0 %v441_v0  ;;  %v448_v3 = vld [vmem:[#allocation6 + $0x30] sm:$0xff]  ;;  %v438_v4 = vld [vmem:[#allocation2] sm:$0xff] }
  0x14   :  { %228 = vmatpush.bf16.msra.mxu1 %v449_v1  ;;  %458 = vmatpush.bf16.msra.mxu3 %v449_v1  ;;  %v447_v5 = vld [vmem:[#allocation6 + $0x28] sm:$0xff]  ;;  %v446_v6 = vld [vmem:[#allocation6 + $0x20] sm:$0xff]  ;;  %v445_v8 = vld [vmem:[#allocation6 + $0x18] sm:$0xff] }
  0x15   :  { %v439_v7 = vld [vmem:[#allocation2 + $0x8] sm:$0xff]  ;;  %v444_v9 = vld [vmem:[#allocation6 + $0x10] sm:$0xff]  ;;  %v442_v11 = vld [vmem:[#allocation6] sm:$0xff] }
  0x16   :  { %v443_v10 = vld [vmem:[#allocation6 + $0x8] sm:$0xff]  ;;  %v480_v13 = vld [vmem:[%s666_s2] ss:$0 sm:$0xff]  ;;  %v457_v14 = vld [vmem:[#allocation7 + $0x38] sm:$0xff] }
  0x17   :  { %138 = vmatpush.bf16.msra.mxu0 %v440_v2  ;;  %v456_v15 = vld [vmem:[#allocation7 + $0x30] sm:$0xff]  ;;  %466 = vmatpush.bf16.msra.mxu2 %v457_v14  ;;  %v455_v17 = vld [vmem:[#allocation7 + $0x28] sm:$0xff]  ;;  %v454_v22 = vld [vmem:[#allocation7 + $0x20] sm:$0xff] }
  0x18   :  { %229 = vmatpush.bf16.msra.mxu1 %v448_v3  ;;  %459 = vmatpush.bf16.msra.mxu3 %v448_v3  ;;  %v453_v35 = vld [vmem:[#allocation7 + $0x18] sm:$0xff]  ;;  %v452_v36 = vld [vmem:[#allocation7 + $0x10] sm:$0xff]  ;;  %v451_v37 = vld [vmem:[#allocation7 + $0x8] sm:$0xff] }
  0x19   :  { %v450_v38 = vld [vmem:[#allocation7] sm:$0xff] }
  0x1a   :  { %372 = vmatmul.msk.bf16.vlgmr.msra.gmra.mxu0 %vm124_vm0, %v438_v4  ;;  %v481_v40 = vld [vmem:[%s668_s4] ss:$0 sm:$0xff] }
  0x1b   :  { %325 = vmatpush.bf16.msrb.mxu0 %v457_v14  ;;  %467 = vmatpush.bf16.msra.mxu2 %v456_v15  ;;  %v482_v58 = vld [vmem:[%s670_s6] ss:$0 sm:$0xff] }
  0x1c   :  { %230 = vmatpush.bf16.msra.mxu1 %v447_v5  ;;  %460 = vmatpush.bf16.msra.mxu3 %v447_v5 }
  0x1f   :  { %326 = vmatpush.bf16.msrb.mxu0 %v456_v15  ;;  %468 = vmatpush.bf16.msra.mxu2 %v455_v17 }
  0x20   :  { %231 = vmatpush.bf16.msra.mxu1 %v446_v6  ;;  %461 = vmatpush.bf16.msra.mxu3 %v446_v6 }
  0x23   :  { %327 = vmatpush.bf16.msrb.mxu0 %v455_v17  ;;  %469 = vmatpush.bf16.msra.mxu2 %v454_v22 }
  0x24   :  { %232 = vmatpush.bf16.msra.mxu1 %v445_v8  ;;  %462 = vmatpush.bf16.msra.mxu3 %v445_v8 }
  0x27   :  { %328 = vmatpush.bf16.msrb.mxu0 %v454_v22  ;;  %470 = vmatpush.bf16.msra.mxu2 %v453_v35 }
  0x28   :  { %233 = vmatpush.bf16.msra.mxu1 %v444_v9  ;;  %463 = vmatpush.bf16.msra.mxu3 %v444_v9 }
  0x2a   :  { %373 = vmatmul.msk.bf16.gmra.mxu0 %vm124_vm0, %v439_v7 }
  0x2b   :  { %329 = vmatpush.bf16.msrb.mxu0 %v453_v35  ;;  %471 = vmatpush.bf16.msra.mxu2 %v452_v36 }
  0x2c   :  { %234 = vmatpush.bf16.msra.mxu1 %v443_v10  ;;  %464 = vmatpush.bf16.msra.mxu3 %v443_v10 }
  0x2f   :  { %330 = vmatpush.bf16.msrb.mxu0 %v452_v36  ;;  %472 = vmatpush.bf16.msra.mxu2 %v451_v37 }
  0x30   :  { %235 = vmatpush.bf16.msra.mxu1 %v442_v11  ;;  %465 = vmatpush.bf16.msra.mxu3 %v442_v11 }
  0x33   :  { %331 = vmatpush.bf16.msrb.mxu0 %v451_v37  ;;  %473 = vmatpush.bf16.msra.mxu2 %v450_v38 }
  0x37   :  { %332 = vmatpush.bf16.msrb.mxu0 %v450_v38 }
  0x97   :  { %v140_v12 = vpop.f32.mrf.mxu0 }
  0x98   :  { %v141_v16 = vadd.f32 %v480_v13, %v140_v12 }
  0x9a   :  { %v150_v19 = vmul.f32 0.2, %v141_v16 }
  0x9c   :  { %v154_v23 = vmax.f32 %v141_v16, %v150_v19 }
  0x9f   :  { %v142_v18 = vpop.f32.mrf.mxu0 }
  0xa0   :  { %v143_v20 = vadd.f32 %v480_v13, %v142_v18 }
  0xa2   :  { %v151_v21 = vmul.f32 0.2, %v143_v20 }
  0xa4   :  { %v155_v24 = vmax.f32 %v143_v20, %v151_v21 }
  0xa6   :  { %v158_v25 = vpack.c.bf16 %v155_v24, %v154_v23 }
  0xa7   :  { %v145_v26 = vpop.f32.mrf.mxu0 }
  0xa8   :  { %236 = vmatmul.bf16.vlgmr.msra.gmra.mxu1 %v158_v25  ;;  %v146_v27 = vadd.f32 %v480_v13, %v145_v26 }
  0xaa   :  { %v152_v29 = vmul.f32 0.2, %v146_v27 }
  0xac   :  { %v156_v32 = vmax.f32 %v146_v27, %v152_v29 }
  0xaf   :  { %v147_v28 = vpop.f32.mrf.mxu0 }
  0xb0   :  { %v148_v30 = vadd.f32 %v480_v13, %v147_v28 }
  0xb2   :  { %v153_v31 = vmul.f32 0.2, %v148_v30 }
  0xb4   :  { %v157_v33 = vmax.f32 %v148_v30, %v153_v31 }
  0xb6   :  { %v159_v34 = vpack.c.bf16 %v157_v33, %v156_v32 }
  0xb8   :  { %241 = vmatmul.bf16.vlgmr.msra.gmra.mxu3 %v159_v34 }
 0x125   :  { %v237_v39 = vpop.f32.mrf.mxu1 }
 0x126   :  { %v238_v41 = vadd.f32 %v481_v40, %v237_v39 }
 0x128   :  { %v247_v43 = vmul.f32 0.2, %v238_v41 }
 0x12a   :  { %v251_v46 = vmax.f32 %v238_v41, %v247_v43 }
 0x12d   :  { %v239_v42 = vpop.f32.mrf.mxu1 }
 0x12e   :  { %v240_v44 = vadd.f32 %v481_v40, %v239_v42 }
 0x130   :  { %v248_v45 = vmul.f32 0.2, %v240_v44 }
 0x132   :  { %v252_v47 = vmax.f32 %v240_v44, %v248_v45 }
 0x134   :  { %v255_v48 = vpack.c.bf16 %v252_v47, %v251_v46 }
 0x136   :  { %333 = vmatmul.bf16.vlgmr.msrb.gmra.mxu0 %v255_v48 }
 0x13b   :  { %v242_v49 = vpop.f32.mrf.mxu3 }
 0x13c   :  { %v243_v50 = vadd.f32 %v481_v40, %v242_v49 }
 0x13e   :  { %v249_v52 = vmul.f32 0.2, %v243_v50 }
 0x140   :  { %v253_v55 = vmax.f32 %v243_v50, %v249_v52 }
 0x143   :  { %v244_v51 = vpop.f32.mrf.mxu3 }
 0x144   :  { %v245_v53 = vadd.f32 %v481_v40, %v244_v51 }
 0x146   :  { %v250_v54 = vmul.f32 0.2, %v245_v53 }
 0x148   :  { %v254_v56 = vmax.f32 %v245_v53, %v250_v54 }
 0x14a   :  { %v256_v57 = vpack.c.bf16 %v254_v56, %v253_v55 }
 0x14c   :  { %338 = vmatmul.bf16.vlgmr.msra.gmra.mxu2 %v256_v57 }
 0x1b3   :  { %v334_v59 = vpop.f32.mrf.mxu0 }
 0x1b4   :  { %v335_v60 = vadd.f32 %v482_v58, %v334_v59 }
 0x1b6   :  { %345 = vst.msk [vmem:[%s671_s7] sm:$0xff] %vm344_vm1, %v335_v60 }
 0x1bb   :  { %v336_v61 = vpop.f32.mrf.mxu0 }
 0x1bc   :  { %v337_v62 = vadd.f32 %v482_v58, %v336_v61 }
 0x1be   :  { %346 = vst.msk [vmem:[%s671_s7 + $0x8] sm:$0xff] %vm344_vm1, %v337_v62 }
 0x1cf   :  { %v339_v63 = vpop.f32.mrf.mxu2 }
 0x1d0   :  { %v340_v0 = vadd.f32 %v482_v58, %v339_v63 }
 0x1d2   :  { %347 = vst.msk [vmem:[%s671_s7 + $0x10] sm:$0xff] %vm344_vm1, %v340_v0 }
 0x1d7   :  { %v341_v1 = vpop.f32.mrf.mxu2 }
 0x1d8   :  { %v342_v2 = vadd.f32 %v482_v58, %v341_v1 }
 0x1da   :  { %348 = vst.msk [vmem:[%s671_s7 + $0x18] sm:$0xff] %vm344_vm1, %v342_v2 }
 0x1db   :  { %353 = vsyncpa [#allocation3], 1 }
 0x1dc   :  { %354 = vsyncpa [#allocation5], 1 }
 0x1dd   :  { %355 = vsyncpa [#allocation8], 1 }

</bundles_post_ra>
